<compile_context>
chip_gen: v6e
topology: v6e:2x2x1
jax: 0.10.0
libtpu: 0.0.40
codegen_flags: <defaults>
</compile_context>

<pallas_src>
import functools

import jax
import jax.numpy as jnp
from jax import lax
from jax.experimental import pallas as pl
from jax.experimental.pallas import tpu as pltpu


def _round_up(x: int, m: int) -> int:
    return ((x + m - 1) // m) * m


def _choose_tiles(M: int, K: int, N: int, *, tm_max=256, tk_max=512, tn_max=256):
    """Pick padded sizes and tile sizes that satisfy the (8,128) rules and stay
    well under the v7x 64 MiB per-TC VMEM budget (double-buffered)."""
    # M (sublane axis of x / out): multiple of 8, or tiled at tm_max.
    if M <= tm_max:
        Mp = _round_up(max(M, 8), 8)
        tm = Mp
    else:
        tm = tm_max
        Mp = _round_up(M, tm)
    # K (reduction): single full-extent block if it fits, else 512-wide tiles.
    if K <= tk_max:
        Kp = K
        tk = K
    else:
        tk = tk_max
        Kp = _round_up(K, tk)
    # N (lane axis of out): always lane-dense — multiple of 128.
    Np = _round_up(max(N, 128), 128)
    if Np <= tn_max:
        tn = Np
    else:
        tn = tn_max
        Np = _round_up(Np, tn)
    return (Mp, Kp, Np), (tm, tk, tn)


def _linear_kernel(x_ref, w_ref, b_ref, o_ref, acc_ref):
    # x_ref: (tm, tk)   w_ref: (tn, tk)  [native PyTorch layout, no HBM transpose]
    # b_ref: (1, tn)    o_ref: (tm, tn)  acc_ref: (tm, tn) f32 scratch
    k = pl.program_id(2)

    @pl.when(k == 0)
    def _():
        acc_ref[...] = jnp.zeros_like(acc_ref)

    # Contract x's dim 1 with weight's dim 1 -> (tm, tn) on the MXU.
    acc_ref[...] += lax.dot_general(
        x_ref[...], w_ref[...],
        dimension_numbers=(((1,), (1,)), ((), ())),
        preferred_element_type=jnp.float32,
        precision=lax.Precision.HIGHEST,
    )

    @pl.when(k == pl.num_programs(2) - 1)
    def _():
        # Bias added exactly once, on the final reduction step.
        o_ref[...] = (acc_ref[...] + b_ref[...]).astype(o_ref.dtype)


@functools.partial(jax.jit, static_argnames=())
def linear_forward(x, weight, bias):
    """Equivalent of torch.nn.Linear: x @ weight.T + bias.

    x:      [B, D_in]      float32
    weight: [D_out, D_in]  float32 (native PyTorch convention, used as-is)
    bias:   [D_out]        float32
    returns [B, D_out]     float32
    """
    M, K = x.shape
    N = weight.shape[0]
    (Mp, Kp, Np), (tm, tk, tn) = _choose_tiles(M, K, N)

    # Zero-pad to aligned, lane-dense shapes (zeros do not change the matmul).
    xp = x if (Mp == M and Kp == K) else jnp.pad(x, ((0, Mp - M), (0, Kp - K)))
    wp = weight if (Np == N and Kp == K) else jnp.pad(
        weight, ((0, Np - N), (0, Kp - K)))
    bp = bias if Np == N else jnp.pad(bias, (0, Np - N))
    bp = bp.reshape(1, Np)

    grid = (Mp // tm, Np // tn, Kp // tk)

    # Explicit VMEM budget: double-buffered in/out blocks + accumulator,
    # with headroom; stays safely inside v7x's 64 MiB per-TC VMEM.
    block_bytes = 4 * (2 * (tm * tk + tn * tk + tn + tm * tn) + tm * tn)
    vmem_limit = min(64 * 1024 * 1024, max(2 * block_bytes, 16 * 1024 * 1024))

    out_padded = pl.pallas_call(
        _linear_kernel,
        out_shape=jax.ShapeDtypeStruct((Mp, Np), x.dtype),
        grid_spec=pltpu.PrefetchScalarGridSpec(
            num_scalar_prefetch=0,
            grid=grid,
            in_specs=[
                pl.BlockSpec((tm, tk), lambda i, j, k: (i, k)),   # x
                pl.BlockSpec((tn, tk), lambda i, j, k: (j, k)),   # weight (native)
                pl.BlockSpec((1, tn), lambda i, j, k: (0, j)),    # bias
            ],
            out_specs=pl.BlockSpec((tm, tn), lambda i, j, k: (i, j)),
            scratch_shapes=[pltpu.VMEM((tm, tn), jnp.float32)],
        ),
        compiler_params=pltpu.CompilerParams(
            dimension_semantics=("parallel", "parallel", "arbitrary"),
            vmem_limit_bytes=vmem_limit,
        ),
    )(xp, wp, bp)

    return out_padded[:M, :N]


if __name__ == "__main__":
    key = jax.random.PRNGKey(0)

    def make_case(key, B, d_in, d_out):
        kx, kw, kb = jax.random.split(key, 3)
        x = jax.random.normal(kx, (B, d_in), dtype=jnp.float32)
        bound = 1.0 / jnp.sqrt(jnp.float32(d_in))
        weight = jax.random.uniform(kw, (d_out, d_in),
                                    minval=-bound, maxval=bound,
                                    dtype=jnp.float32)
        bias = jax.random.uniform(kb, (d_out,),
                                  minval=-bound, maxval=bound,
                                  dtype=jnp.float32)
        return x, weight, bias

    # 1) Small shapes consistent with the module: batch=8, input_dim=32, output_dim=4.
    k1, k2 = jax.random.split(key)
    x, w, b = make_case(k1, 8, 32, 4)
    out = jax.block_until_ready(linear_forward(x, w, b))
    ref = jnp.dot(x, w.T, precision=lax.Precision.HIGHEST) + b
    assert out.shape == (8, 4)
    assert jnp.allclose(out, ref, atol=1e-5, rtol=1e-5)

    # 2) A tiled case (exercises the 3-D grid / accumulator pipeline).
    x2, w2, b2 = make_case(k2, 512, 1024, 384)
    out2 = jax.block_until_ready(linear_forward(x2, w2, b2))
    ref2 = jnp.dot(x2, w2.T, precision=lax.Precision.HIGHEST) + b2
    assert out2.shape == (512, 384)
    assert jnp.allclose(out2, ref2, atol=1e-4, rtol=1e-5)

    print("KERNEL_OK")
</pallas_src>

<mosaic_0001>
module attributes {stable_mosaic.version = 11 : i64} {
  func.func @_linear_kernel(%arg0: i32, %arg1: i32, %arg2: i32, %arg3: memref<8x32xf32, #tpu.memory_space<vmem>>, %arg4: memref<128x32xf32, #tpu.memory_space<vmem>>, %arg5: memref<1x128xf32, #tpu.memory_space<vmem>>, %arg6: memref<8x128xf32, #tpu.memory_space<vmem>>, %arg7: memref<8x128xf32, #tpu.memory_space<vmem>>) attributes {dimension_semantics = [#tpu.dimension_semantics<parallel>, #tpu.dimension_semantics<parallel>, #tpu.dimension_semantics<arbitrary>], iteration_bounds = array<i64: 1, 1, 1>, scalar_prefetch = 0 : i64, scratch_operands = 1 : i64, tpu.core_type = #tpu.core_type<tc>, window_params = [{transform_indices = @transform_0, window_bounds = array<i64: 8, 32>}, {transform_indices = @transform_1, window_bounds = array<i64: 128, 32>}, {transform_indices = @transform_2, window_bounds = array<i64: 1, 128>}, {transform_indices = @transform_3, window_bounds = array<i64: 8, 128>}]} {
    %c0_i32 = arith.constant 0 : i32
    %0 = arith.cmpi eq, %arg2, %c0_i32 : i32
    %1 = arith.extui %0 : i1 to i32
    %c0_i32_0 = arith.constant 0 : i32
    %2 = arith.cmpi ne, %1, %c0_i32_0 : i32
    scf.if %2 {
      %cst_10 = arith.constant 0.000000e+00 : f32
      %12 = vector.broadcast %cst_10 : f32 to vector<8x128xf32>
      %c0_11 = arith.constant 0 : index
      %c0_12 = arith.constant 0 : index
      %13 = vector.load %arg7[%c0_11, %c0_12] : memref<8x128xf32, #tpu.memory_space<vmem>>, vector<8x128xf32>
      tpu.vector_store %arg7[%c0_11, %c0_12], %12 {strides = array<i32>} : memref<8x128xf32, #tpu.memory_space<vmem>>, vector<8x128xf32>,
    } else {
    }
    %c0 = arith.constant 0 : index
    %c0_1 = arith.constant 0 : index
    %3 = vector.load %arg7[%c0, %c0_1] : memref<8x128xf32, #tpu.memory_space<vmem>>, vector<8x128xf32>
    %c0_2 = arith.constant 0 : index
    %c0_3 = arith.constant 0 : index
    %4 = vector.load %arg3[%c0_2, %c0_3] : memref<8x32xf32, #tpu.memory_space<vmem>>, vector<8x32xf32>
    %c0_4 = arith.constant 0 : index
    %c0_5 = arith.constant 0 : index
    %5 = vector.load %arg4[%c0_4, %c0_5] : memref<128x32xf32, #tpu.memory_space<vmem>>, vector<128x32xf32>
    %cst = arith.constant dense<0.000000e+00> : vector<8x128xf32>
    %6 = tpu.matmul %4, %5, %cst {dimension_numbers = #tpu.dot_dimension_numbers<[1], [1], [0], [0], [0, 0, 1, 0], [], []>, precision = #tpu.contract_precision<fp32>} : vector<8x32xf32>, vector<128x32xf32>, vector<8x128xf32> -> vector<8x128xf32>
    %7 = arith.addf %3, %6 : vector<8x128xf32>
    %c0_6 = arith.constant 0 : index
    %c0_7 = arith.constant 0 : index
    %8 = vector.load %arg7[%c0_6, %c0_7] : memref<8x128xf32, #tpu.memory_space<vmem>>, vector<8x128xf32>
    tpu.vector_store %arg7[%c0_6, %c0_7], %7 {strides = array<i32>} : memref<8x128xf32, #tpu.memory_space<vmem>>, vector<8x128xf32>,
    %c0_i32_8 = arith.constant 0 : i32
    %9 = arith.cmpi eq, %arg2, %c0_i32_8 : i32
    %10 = arith.extui %9 : i1 to i32
    %c0_i32_9 = arith.constant 0 : i32
    %11 = arith.cmpi ne, %10, %c0_i32_9 : i32
    scf.if %11 {
      %c0_10 = arith.constant 0 : index
      %c0_11 = arith.constant 0 : index
      %12 = vector.load %arg7[%c0_10, %c0_11] : memref<8x128xf32, #tpu.memory_space<vmem>>, vector<8x128xf32>
      %c0_12 = arith.constant 0 : index
      %c0_13 = arith.constant 0 : index
      %13 = vector.load %arg5[%c0_12, %c0_13] : memref<1x128xf32, #tpu.memory_space<vmem>>, vector<1x128xf32>
      %14 = vector.broadcast %13 : vector<1x128xf32> to vector<8x128xf32>
      %15 = arith.addf %12, %14 : vector<8x128xf32>
      %c0_14 = arith.constant 0 : index
      %c0_15 = arith.constant 0 : index
      %16 = vector.load %arg6[%c0_14, %c0_15] : memref<8x128xf32, #tpu.memory_space<vmem>>, vector<8x128xf32>
      tpu.vector_store %arg6[%c0_14, %c0_15], %15 {strides = array<i32>} : memref<8x128xf32, #tpu.memory_space<vmem>>, vector<8x128xf32>,
    } else {
    }
    return
  }
  func.func @transform_0(%arg0: i32, %arg1: i32, %arg2: i32) -> (i32, i32) {
    %c0_i32 = arith.constant 0 : i32
    return %arg0, %arg2 : i32, i32
  }
  func.func @transform_1(%arg0: i32, %arg1: i32, %arg2: i32) -> (i32, i32) {
    %c0_i32 = arith.constant 0 : i32
    return %arg1, %arg2 : i32, i32
  }
  func.func @transform_2(%arg0: i32, %arg1: i32, %arg2: i32) -> (i32, i32) {
    %c0_i32 = arith.constant 0 : i32
    %c0_i32_0 = arith.constant 0 : i32
    return %c0_i32, %arg1 : i32, i32
  }
  func.func @transform_3(%arg0: i32, %arg1: i32, %arg2: i32) -> (i32, i32) {
    %c0_i32 = arith.constant 0 : i32
    return %arg0, %arg1 : i32, i32
  }
}

</mosaic_0001>

<bundles_post_ra>
// kernel: linear_forward.1
= control target key start
LH: loop header
LB: loop body
LE: loop exit
PB: predicated region body
PF: predicated region fallthrough
CT: control target
= control target key end

     0   :  { %vm37_vm0 = vcmask 261120   ;;  %v1064_v0 = vmov 0.0   ;;  %vm1065_vm1 = vmmov 0   ;;  %s1523_s1 = inlined_call_operand.vmem [shape: f32[128,32], index: 1, kind: input, shape index: {}]   ;;  %s1524_s0 = inlined_call_operand.vmem [shape: f32[8,32], index: 0, kind: input, shape index: {}]   ;;  %s1525_s2 = inlined_call_operand.vmem [shape: f32[1,128], index: 2, kind: input, shape index: {}]   ;;  %s1526_s3 = inlined_call_operand.vmem [shape: f32[8,128], index: 3, kind: output, shape index: {}]  }
   0x1   :  { %852 = vmatprep.subr.mxu0 %v1064_v0  ;;  %v36_v1 = vld [vmem:[%s1523_s1 + $0x78] sm:$0xff]  ;;  %v35_v2 = vld [vmem:[%s1523_s1 + $0x70] sm:$0xff]  ;;  %887 = vmatprep.subr.mxu1 %v1064_v0  ;;  %v34_v3 = vld [vmem:[%s1523_s1 + $0x68] sm:$0xff] }
   0x2   :  { %v87_v4 = vsel %vm37_vm0, %v36_v1, 0  ;;  %v84_v5 = vsel %vm37_vm0, %v35_v2, 0  ;;  %v81_v6 = vsel %vm37_vm0, %v34_v3, 0  ;;  %v33_v7 = vld [vmem:[%s1523_s1 + $0x60] sm:$0xff]  ;;  %v32_v8 = vld [vmem:[%s1523_s1 + $0x58] sm:$0xff]  ;;  %884 = vmatprep.mubr.msk.f32.mxu0 %vm1065_vm1, %v1064_v0  ;;  %919 = vmatprep.mubr.msk.f32.mxu1 %vm1065_vm1, %v1064_v0  ;;  %v31_v18 = vld [vmem:[%s1523_s1 + $0x50] sm:$0xff] }
   0x3   :  { %v1110_v9 = vand.u32 4294901760, %v87_v4  ;;  %v1112_v10 = vand.u32 4294901760, %v84_v5  ;;  %v1114_v11 = vand.u32 4294901760, %v81_v6  ;;  %v78_v12 = vsel %vm37_vm0, %v33_v7, 0  ;;  %v30_v27 = vld [vmem:[%s1523_s1 + $0x48] sm:$0xff]  ;;  %v29_v35 = vld [vmem:[%s1523_s1 + $0x40] sm:$0xff] }
   0x4   :  { %v1117_v13 = vand.u32 4294901760, %v78_v12  ;;  %v75_v16 = vsel %vm37_vm0, %v32_v8, 0  ;;  %v72_v22 = vsel %vm37_vm0, %v31_v18, 0  ;;  %v69_v30 = vsel %vm37_vm0, %v30_v27, 0  ;;  %v28_v42 = vld [vmem:[%s1523_s1 + $0x38] sm:$0xff]  ;;  %v27_v49 = vld [vmem:[%s1523_s1 + $0x30] sm:$0xff] }
   0x5   :  { %853 = vmatpush3.xpose.msra.mxu0 %v1110_v9  ;;  %v1121_v14 = vsub.f32 %v87_v4, %v1110_v9  ;;  %v1124_v15 = vsub.f32 %v84_v5, %v1112_v10  ;;  %v1128_v17 = vsub.f32 %v81_v6, %v1114_v11  ;;  %v1136_v21 = vand.u32 4294901760, %v75_v16  ;;  %v26_v56 = vld [vmem:[%s1523_s1 + $0x28] sm:$0xff]  ;;  %v25_v63 = vld [vmem:[%s1523_s1 + $0x20] sm:$0xff]  ;;  %v24_v7 = vld [vmem:[%s1523_s1 + $0x18] sm:$0xff] }
   0x6   :  { %854 = vmatprep.subr.mxu0 %v1064_v0  ;;  %v1148_v26 = vsub.f32 %v78_v12, %v1117_v13  ;;  %v1154_v29 = vand.u32 4294901760, %v72_v22  ;;  %v1170_v36 = vand.u32 4294901760, %v69_v30  ;;  %v66_v41 = vsel %vm37_vm0, %v29_v35, 0 }
   0x7   :  { %v183_v19 = vand.u32 4294901760, %v1121_v14  ;;  %v190_v20 = vand.u32 4294901760, %v1124_v15  ;;  %v197_v25 = vand.u32 4294901760, %v1128_v17  ;;  %v1163_v34 = vsub.f32 %v75_v16, %v1136_v21 }
   0x8   :  { %v204_v33 = vand.u32 4294901760, %v1148_v26  ;;  %v1173_v37 = vsub.f32 %v72_v22, %v1154_v29  ;;  %v1186_v43 = vand.u32 4294901760, %v66_v41  ;;  %v63_v47 = vsel %vm37_vm0, %v28_v42, 0 }
   0x9   :  { %855 = vmatpush3.xpose.msra.mxu0 %v1112_v10  ;;  %v184_v23 = vsub.f32 %v1121_v14, %v183_v19  ;;  %v191_v24 = vsub.f32 %v1124_v15, %v190_v20  ;;  %v198_v32 = vsub.f32 %v1128_v17, %v197_v25  ;;  %v211_v40 = vand.u32 4294901760, %v1163_v34 }
   0xa   :  { %856 = vmatprep.subr.mxu0 %v1064_v0  ;;  %v205_v39 = vsub.f32 %v1148_v26, %v204_v33  ;;  %v218_v44 = vand.u32 4294901760, %v1173_v37  ;;  %v1195_v48 = vsub.f32 %v69_v30, %v1170_v36  ;;  %v1205_v51 = vand.u32 4294901760, %v63_v47 }
   0xb   :  { %v185_v28 = vand.u32 4294901760, %v184_v23  ;;  %v192_v31 = vand.u32 4294901760, %v191_v24  ;;  %v199_v38 = vand.u32 4294901760, %v198_v32  ;;  %v212_v46 = vsub.f32 %v1163_v34, %v211_v40  ;;  %v23_v24 = vld [vmem:[%s1523_s1 + $0x10] sm:$0xff] }
   0xc   :  { %v206_v45 = vand.u32 4294901760, %v205_v39  ;;  %v219_v50 = vsub.f32 %v1173_v37, %v218_v44  ;;  %v225_v53 = vand.u32 4294901760, %v1195_v48  ;;  %v60_v54 = vsel %vm37_vm0, %v27_v49, 0  ;;  %v20_v39 = vld [vmem:[%s1524_s0] sm:$0xff] }
   0xd   :  { %857 = vmatpush3.xpose.msra.mxu0 %v1114_v11  ;;  %888 = vmatpush3.xpose.msra.mxu1 %v185_v28  ;;  %v213_v52 = vand.u32 4294901760, %v212_v46  ;;  %v1211_v55 = vsub.f32 %v66_v41, %v1186_v43  ;;  %v1218_v57 = vand.u32 4294901760, %v60_v54  ;;  %v57_v58 = vsel %vm37_vm0, %v26_v56, 0 }
   0xe   :  { %858 = vmatprep.subr.mxu0 %v1064_v0  ;;  %889 = vmatprep.subr.mxu1 %v1064_v0  ;;  %v220_v59 = vand.u32 4294901760, %v219_v50  ;;  %v226_v60 = vsub.f32 %v1195_v48, %v225_v53  ;;  %v1227_v62 = vsub.f32 %v63_v47, %v1205_v51  ;;  %v1234_v1 = vand.u32 4294901760, %v57_v58  ;;  %v21_v50 = vld [vmem:[%s1523_s1] sm:$0xff] }
   0xf   :  { %v232_v61 = vand.u32 4294901760, %v1211_v55  ;;  %v54_v2 = vsel %vm37_vm0, %v25_v63, 0  ;;  %v1243_v6 = vsub.f32 %v60_v54, %v1218_v57  ;;  %v51_v12 = vsel %vm37_vm0, %v24_v7, 0 }
  0x10   :  { %v227_v3 = vand.u32 4294901760, %v226_v60  ;;  %v239_v5 = vand.u32 4294901760, %v1227_v62  ;;  %v1250_v8 = vand.u32 4294901760, %v54_v2  ;;  %v1259_v23 = vsub.f32 %v57_v58, %v1234_v1 }
  0x11   :  { %859 = vmatpush3.xpose.msra.mxu0 %v1117_v13  ;;  %890 = vmatpush3.xpose.msra.mxu1 %v192_v31  ;;  %v233_v4 = vsub.f32 %v1211_v55, %v232_v61  ;;  %v246_v22 = vand.u32 4294901760, %v1243_v6  ;;  %v1266_v27 = vand.u32 4294901760, %v51_v12  ;;  %v48_v35 = vsel %vm37_vm0, %v23_v24, 0 }
  0x12   :  { %860 = vmatprep.subr.mxu0 %v1064_v0  ;;  %891 = vmatprep.subr.mxu1 %v1064_v0  ;;  %v240_v18 = vsub.f32 %v1227_v62, %v239_v5  ;;  %v1269_v28 = vsub.f32 %v54_v2, %v1250_v8  ;;  %v253_v32 = vand.u32 4294901760, %v1259_v23  ;;  %v1285_v41 = vand.u32 4294901760, %v48_v35 }
  0x13   :  { %v234_v16 = vand.u32 4294901760, %v233_v4  ;;  %v247_v31 = vsub.f32 %v1243_v6, %v246_v22  ;;  %v1294_v49 = vsub.f32 %v51_v12, %v1266_v27  ;;  %v42_v56 = vsel %vm37_vm0, %v21_v50, 0 }
  0x14   :  { %v241_v30 = vand.u32 4294901760, %v240_v18  ;;  %v260_v42 = vand.u32 4294901760, %v1269_v28  ;;  %v254_v47 = vsub.f32 %v1259_v23, %v253_v32  ;;  %v1313_v2 = vsub.f32 %v48_v35, %v1285_v41 }
  0x15   :  { %861 = vmatpush3.xpose.msra.mxu0 %v1136_v21  ;;  %892 = vmatpush3.xpose.msra.mxu1 %v199_v38  ;;  %v22_v38 = vld [vmem:[%s1523_s1 + $0x8] sm:$0xff]  ;;  %v248_v46 = vand.u32 4294901760, %v247_v31  ;;  %v267_v63 = vand.u32 4294901760, %v1294_v49 }
  0x16   :  { %862 = vmatprep.subr.mxu0 %v1064_v0  ;;  %893 = vmatprep.subr.mxu1 %v1064_v0  ;;  %v261_v60 = vsub.f32 %v1269_v28, %v260_v42 }
  0x17   :  { %v268_v12 = vsub.f32 %v1294_v49, %v267_v63 }
  0x18   :  { %v262_v7 = vand.u32 4294901760, %v261_v60 }
  0x19   :  { %863 = vmatpush3.xpose.msra.mxu0 %v1154_v29  ;;  %894 = vmatpush3.xpose.msra.mxu1 %v206_v45  ;;  %v45_v45 = vsel %vm37_vm0, %v22_v38, 0 }
  0x1a   :  { %864 = vmatprep.subr.mxu0 %v1064_v0  ;;  %895 = vmatprep.subr.mxu1 %v1064_v0  ;;  %v1302_v54 = vand.u32 4294901760, %v45_v45 }
  0x1c   :  { %v1328_v18 = vsub.f32 %v45_v45, %v1302_v54 }
  0x1d   :  { %865 = vmatpush3.xpose.msra.mxu0 %v1170_v36  ;;  %896 = vmatpush3.xpose.msra.mxu1 %v213_v52  ;;  %v39_v52 = vsel %vm37_vm0, %v20_v39, 0 }
  0x1e   :  { %866 = vmatprep.subr.mxu0 %v1064_v0  ;;  %897 = vmatprep.subr.mxu1 %v1064_v0  ;;  %v1305_v58 = vand.u32 4294901760, %v39_v52  ;;  %v281_v35 = vand.u32 4294901760, %v1328_v18 }
  0x20   :  { %v1320_v4 = vsub.f32 %v39_v52, %v1305_v58 }
  0x21   :  { %867 = vmatpush3.xpose.msra.mxu0 %v1186_v43  ;;  %898 = vmatpush3.xpose.msra.mxu1 %v220_v59  ;;  %v255_v59 = vand.u32 4294901760, %v254_v47 }
  0x22   :  { %868 = vmatprep.subr.mxu0 %v1064_v0  ;;  %899 = vmatprep.subr.mxu1 %v1064_v0  ;;  %v172_v24 = vand.u32 4294901760, %v1320_v4 }
  0x24   :  { %v173_v39 = vsub.f32 %v1320_v4, %v172_v24 }
  0x25   :  { %869 = vmatpush3.xpose.msra.mxu0 %v1205_v51  ;;  %900 = vmatpush3.xpose.msra.mxu1 %v227_v3  ;;  %v1317_v3 = vand.u32 4294901760, %v42_v56 }
  0x26   :  { %870 = vmatprep.subr.mxu0 %v1064_v0  ;;  %901 = vmatprep.subr.mxu1 %v1064_v0  ;;  %v174_v50 = vand.u32 4294901760, %v173_v39 }
  0x27   :  { %v1339_v38 = vsub.f32 %v42_v56, %v1317_v3 }
  0x29   :  { %871 = vmatpush3.xpose.msra.mxu0 %v1218_v57  ;;  %902 = vmatpush3.xpose.msra.mxu1 %v234_v16  ;;  %v274_v16 = vand.u32 4294901760, %v1313_v2  ;;  %v288_v47 = vand.u32 4294901760, %v1339_v38 }
  0x2a   :  { %872 = vmatprep.subr.mxu0 %v1064_v0  ;;  %903 = vmatprep.subr.mxu1 %v1064_v0 }
  0x2b   :  { %v275_v31 = vsub.f32 %v1313_v2, %v274_v16  ;;  %v289_v56 = vsub.f32 %v1339_v38, %v288_v47 }
  0x2d   :  { %873 = vmatpush3.xpose.msra.mxu0 %v1234_v1  ;;  %904 = vmatpush3.xpose.msra.mxu1 %v241_v30  ;;  %v269_v30 = vand.u32 4294901760, %v268_v12  ;;  %v276_v45 = vand.u32 4294901760, %v275_v31 }
  0x2e   :  { %874 = vmatprep.subr.mxu0 %v1064_v0  ;;  %905 = vmatprep.subr.mxu1 %v1064_v0 }
  0x31   :  { %875 = vmatpush3.xpose.msra.mxu0 %v1250_v8  ;;  %906 = vmatpush3.xpose.msra.mxu1 %v248_v46  ;;  %v282_v46 = vsub.f32 %v1328_v18, %v281_v35 }
  0x32   :  { %876 = vmatprep.subr.mxu0 %v1064_v0  ;;  %907 = vmatprep.subr.mxu1 %v1064_v0 }
  0x33   :  { %v283_v52 = vand.u32 4294901760, %v282_v46 }
  0x35   :  { %877 = vmatpush3.xpose.msra.mxu0 %v1266_v27  ;;  %908 = vmatpush3.xpose.msra.mxu1 %v255_v59  ;;  %v290_v59 = vand.u32 4294901760, %v289_v56 }
  0x36   :  { %878 = vmatprep.subr.mxu0 %v1064_v0  ;;  %909 = vmatprep.subr.mxu1 %v1064_v0 }
  0x39   :  { %879 = vmatpush3.xpose.msra.mxu0 %v1285_v41  ;;  %910 = vmatpush3.xpose.msra.mxu1 %v262_v7 }
  0x3a   :  { %880 = vmatprep.subr.mxu0 %v1064_v0  ;;  %911 = vmatprep.subr.mxu1 %v1064_v0 }
  0x3d   :  { %881 = vmatpush3.xpose.msra.mxu0 %v1302_v54  ;;  %912 = vmatpush3.xpose.msra.mxu1 %v269_v30 }
  0x3e   :  { %882 = vmatprep.subr.mxu0 %v1064_v0  ;;  %913 = vmatprep.subr.mxu1 %v1064_v0 }
  0x41   :  { %883 = vmatpush3.xpose.msra.mxu0 %v1317_v3  ;;  %914 = vmatpush3.xpose.msra.mxu1 %v276_v45 }
  0x42   :  { %915 = vmatprep.subr.mxu1 %v1064_v0  ;;  %922 = vmatprep.subr.mxu0 %v1064_v0 }
  0x44   :  { %885 = vmatmul.mubr.f32.vlgmr.msra.gmra.mxu0 %v174_v50 }
  0x45   :  { %916 = vmatpush3.xpose.msra.mxu1 %v283_v52  ;;  %923 = vmatpush3.xpose.msra.mxu0 %v1121_v14 }
  0x46   :  { %917 = vmatprep.subr.mxu1 %v1064_v0  ;;  %924 = vmatprep.subr.mxu0 %v1064_v0 }
  0x47   :  { %954 = vmatprep.mubr.msk.f32.mxu0 %vm1065_vm1, %v1064_v0 }
  0x49   :  { %918 = vmatpush3.xpose.msra.mxu1 %v290_v59  ;;  %925 = vmatpush3.xpose.msra.mxu0 %v1124_v15 }
  0x4a   :  { %926 = vmatprep.subr.mxu0 %v1064_v0  ;;  %957 = vmatprep.subr.mxu1 %v1064_v0 }
  0x4c   :  { %920 = vmatmul.mubr.f32.vlgmr.msra.gmra.mxu1 %v1305_v58 }
  0x4d   :  { %927 = vmatpush3.xpose.msra.mxu0 %v1128_v17  ;;  %958 = vmatpush3.xpose.msra.mxu1 %v1110_v9 }
  0x4e   :  { %928 = vmatprep.subr.mxu0 %v1064_v0  ;;  %959 = vmatprep.subr.mxu1 %v1064_v0 }
  0x4f   :  { %989 = vmatprep.mubr.msk.f32.mxu1 %vm1065_vm1, %v1064_v0 }
  0x51   :  { %929 = vmatpush3.xpose.msra.mxu0 %v1148_v26  ;;  %960 = vmatpush3.xpose.msra.mxu1 %v1112_v10 }
  0x52   :  { %930 = vmatprep.subr.mxu0 %v1064_v0  ;;  %961 = vmatprep.subr.mxu1 %v1064_v0 }
  0x55   :  { %931 = vmatpush3.xpose.msra.mxu0 %v1163_v34  ;;  %962 = vmatpush3.xpose.msra.mxu1 %v1114_v11 }
  0x56   :  { %932 = vmatprep.subr.mxu0 %v1064_v0  ;;  %963 = vmatprep.subr.mxu1 %v1064_v0 }
  0x59   :  { %933 = vmatpush3.xpose.msra.mxu0 %v1173_v37  ;;  %964 = vmatpush3.xpose.msra.mxu1 %v1117_v13 }
  0x5a   :  { %934 = vmatprep.subr.mxu0 %v1064_v0  ;;  %965 = vmatprep.subr.mxu1 %v1064_v0 }
  0x5d   :  { %935 = vmatpush3.xpose.msra.mxu0 %v1195_v48  ;;  %966 = vmatpush3.xpose.msra.mxu1 %v1136_v21 }
  0x5e   :  { %936 = vmatprep.subr.mxu0 %v1064_v0  ;;  %967 = vmatprep.subr.mxu1 %v1064_v0 }
  0x61   :  { %937 = vmatpush3.xpose.msra.mxu0 %v1211_v55  ;;  %968 = vmatpush3.xpose.msra.mxu1 %v1154_v29 }
  0x62   :  { %938 = vmatprep.subr.mxu0 %v1064_v0  ;;  %969 = vmatprep.subr.mxu1 %v1064_v0 }
  0x65   :  { %939 = vmatpush3.xpose.msra.mxu0 %v1227_v62  ;;  %970 = vmatpush3.xpose.msra.mxu1 %v1170_v36 }
  0x66   :  { %940 = vmatprep.subr.mxu0 %v1064_v0  ;;  %971 = vmatprep.subr.mxu1 %v1064_v0 }
  0x69   :  { %941 = vmatpush3.xpose.msra.mxu0 %v1243_v6  ;;  %972 = vmatpush3.xpose.msra.mxu1 %v1186_v43 }
  0x6a   :  { %942 = vmatprep.subr.mxu0 %v1064_v0  ;;  %973 = vmatprep.subr.mxu1 %v1064_v0 }
  0x6d   :  { %943 = vmatpush3.xpose.msra.mxu0 %v1259_v23  ;;  %974 = vmatpush3.xpose.msra.mxu1 %v1205_v51 }
  0x6e   :  { %944 = vmatprep.subr.mxu0 %v1064_v0  ;;  %975 = vmatprep.subr.mxu1 %v1064_v0 }
  0x71   :  { %945 = vmatpush3.xpose.msra.mxu0 %v1269_v28  ;;  %976 = vmatpush3.xpose.msra.mxu1 %v1218_v57 }
  0x72   :  { %946 = vmatprep.subr.mxu0 %v1064_v0  ;;  %977 = vmatprep.subr.mxu1 %v1064_v0 }
  0x75   :  { %947 = vmatpush3.xpose.msra.mxu0 %v1294_v49  ;;  %978 = vmatpush3.xpose.msra.mxu1 %v1234_v1 }
  0x76   :  { %948 = vmatprep.subr.mxu0 %v1064_v0  ;;  %979 = vmatprep.subr.mxu1 %v1064_v0 }
  0x79   :  { %949 = vmatpush3.xpose.msra.mxu0 %v1313_v2  ;;  %980 = vmatpush3.xpose.msra.mxu1 %v1250_v8 }
  0x7a   :  { %950 = vmatprep.subr.mxu0 %v1064_v0  ;;  %981 = vmatprep.subr.mxu1 %v1064_v0 }
  0x7d   :  { %951 = vmatpush3.xpose.msra.mxu0 %v1328_v18  ;;  %982 = vmatpush3.xpose.msra.mxu1 %v1266_v27 }
  0x7e   :  { %952 = vmatprep.subr.mxu0 %v1064_v0  ;;  %983 = vmatprep.subr.mxu1 %v1064_v0 }
  0x81   :  { %953 = vmatpush3.xpose.msra.mxu0 %v1339_v38  ;;  %984 = vmatpush3.xpose.msra.mxu1 %v1285_v41 }
  0x82   :  { %985 = vmatprep.subr.mxu1 %v1064_v0  ;;  %992 = vmatprep.subr.mxu0 %v1064_v0 }
  0x84   :  { %955 = vmatmul.mubr.f32.vlgmr.msra.gmra.mxu0 %v1320_v4 }
  0x85   :  { %986 = vmatpush3.xpose.msra.mxu1 %v1302_v54  ;;  %993 = vmatpush3.xpose.msra.mxu0 %v183_v19 }
  0x86   :  { %987 = vmatprep.subr.mxu1 %v1064_v0  ;;  %994 = vmatprep.subr.mxu0 %v1064_v0 }
  0x87   :  { %1024 = vmatprep.mubr.msk.f32.mxu0 %vm1065_vm1, %v1064_v0 }
  0x89   :  { %988 = vmatpush3.xpose.msra.mxu1 %v1317_v3  ;;  %995 = vmatpush3.xpose.msra.mxu0 %v190_v20 }
  0x8a   :  { %996 = vmatprep.subr.mxu0 %v1064_v0  ;;  %1027 = vmatprep.subr.mxu1 %v1064_v0 }
  0x8c   :  { %990 = vmatmul.mubr.f32.vlgmr.msra.gmra.mxu1 %v172_v24 }
  0x8d   :  { %997 = vmatpush3.xpose.msra.mxu0 %v197_v25  ;;  %1028 = vmatpush3.xpose.msra.mxu1 %v1110_v9 }
  0x8e   :  { %998 = vmatprep.subr.mxu0 %v1064_v0  ;;  %1029 = vmatprep.subr.mxu1 %v1064_v0 }
  0x8f   :  { %1059 = vmatprep.mubr.msk.f32.mxu1 %vm1065_vm1, %v1064_v0 }
  0x91   :  { %999 = vmatpush3.xpose.msra.mxu0 %v204_v33  ;;  %1030 = vmatpush3.xpose.msra.mxu1 %v1112_v10 }
  0x92   :  { %1000 = vmatprep.subr.mxu0 %v1064_v0  ;;  %1031 = vmatprep.subr.mxu1 %v1064_v0 }
  0x95   :  { %1001 = vmatpush3.xpose.msra.mxu0 %v211_v40  ;;  %1032 = vmatpush3.xpose.msra.mxu1 %v1114_v11 }
  0x96   :  { %1002 = vmatprep.subr.mxu0 %v1064_v0  ;;  %1033 = vmatprep.subr.mxu1 %v1064_v0 }
  0x99   :  { %1003 = vmatpush3.xpose.msra.mxu0 %v218_v44  ;;  %1034 = vmatpush3.xpose.msra.mxu1 %v1117_v13 }
  0x9a   :  { %1004 = vmatprep.subr.mxu0 %v1064_v0  ;;  %1035 = vmatprep.subr.mxu1 %v1064_v0 }
  0x9d   :  { %1005 = vmatpush3.xpose.msra.mxu0 %v225_v53  ;;  %1036 = vmatpush3.xpose.msra.mxu1 %v1136_v21 }
  0x9e   :  { %1006 = vmatprep.subr.mxu0 %v1064_v0  ;;  %1037 = vmatprep.subr.mxu1 %v1064_v0 }
  0xa1   :  { %1007 = vmatpush3.xpose.msra.mxu0 %v232_v61  ;;  %1038 = vmatpush3.xpose.msra.mxu1 %v1154_v29 }
  0xa2   :  { %1008 = vmatprep.subr.mxu0 %v1064_v0  ;;  %1039 = vmatprep.subr.mxu1 %v1064_v0 }
  0xa5   :  { %1009 = vmatpush3.xpose.msra.mxu0 %v239_v5  ;;  %1040 = vmatpush3.xpose.msra.mxu1 %v1170_v36 }
  0xa6   :  { %1010 = vmatprep.subr.mxu0 %v1064_v0  ;;  %1041 = vmatprep.subr.mxu1 %v1064_v0 }
  0xa9   :  { %1011 = vmatpush3.xpose.msra.mxu0 %v246_v22  ;;  %1042 = vmatpush3.xpose.msra.mxu1 %v1186_v43 }
  0xaa   :  { %1012 = vmatprep.subr.mxu0 %v1064_v0  ;;  %1043 = vmatprep.subr.mxu1 %v1064_v0 }
  0xad   :  { %1013 = vmatpush3.xpose.msra.mxu0 %v253_v32  ;;  %1044 = vmatpush3.xpose.msra.mxu1 %v1205_v51 }
  0xae   :  { %1014 = vmatprep.subr.mxu0 %v1064_v0  ;;  %1045 = vmatprep.subr.mxu1 %v1064_v0 }
  0xb1   :  { %1015 = vmatpush3.xpose.msra.mxu0 %v260_v42  ;;  %1046 = vmatpush3.xpose.msra.mxu1 %v1218_v57 }
  0xb2   :  { %1016 = vmatprep.subr.mxu0 %v1064_v0  ;;  %1047 = vmatprep.subr.mxu1 %v1064_v0 }
  0xb5   :  { %1017 = vmatpush3.xpose.msra.mxu0 %v267_v63  ;;  %1048 = vmatpush3.xpose.msra.mxu1 %v1234_v1 }
  0xb6   :  { %1018 = vmatprep.subr.mxu0 %v1064_v0  ;;  %1049 = vmatprep.subr.mxu1 %v1064_v0 }
  0xb9   :  { %1019 = vmatpush3.xpose.msra.mxu0 %v274_v16  ;;  %1050 = vmatpush3.xpose.msra.mxu1 %v1250_v8 }
  0xba   :  { %1020 = vmatprep.subr.mxu0 %v1064_v0  ;;  %1051 = vmatprep.subr.mxu1 %v1064_v0 }
  0xbd   :  { %1021 = vmatpush3.xpose.msra.mxu0 %v281_v35  ;;  %1052 = vmatpush3.xpose.msra.mxu1 %v1266_v27 }
  0xbe   :  { %1022 = vmatprep.subr.mxu0 %v1064_v0  ;;  %1053 = vmatprep.subr.mxu1 %v1064_v0 }
  0xc1   :  { %1023 = vmatpush3.xpose.msra.mxu0 %v288_v47  ;;  %1054 = vmatpush3.xpose.msra.mxu1 %v1285_v41 }
  0xc2   :  { %1055 = vmatprep.subr.mxu1 %v1064_v0 }
  0xc4   :  { %1025 = vmatmul.mubr.f32.vlgmr.msra.gmra.mxu0 %v1305_v58 }
  0xc5   :  { %1056 = vmatpush3.xpose.msra.mxu1 %v1302_v54 }
  0xc6   :  { %1057 = vmatprep.subr.mxu1 %v1064_v0  ;;  %v749_v0 = vld [vmem:[%s1525_s2] ss:$0 sm:$0xff] }
  0xc9   :  { %1058 = vmatpush3.xpose.msra.mxu1 %v1317_v3 }
  0xcc   :  { %1060 = vmatmul.mubr.f32.vlgmr.msra.gmra.mxu1 %v1305_v58 }
 0x104   :  { %v176_v9 = vpop.f32.mrf.mxu0 }
 0x106   :  { %v886_v10 = vpop.f32.mrf.mxu0 }
 0x10c   :  { %v327_v11 = vpop.f32.mrf.mxu1 }
 0x10d   :  { %v328_v13 = vadd.f32 %v327_v11, %v176_v9 }
 0x10e   :  { %v921_v14 = vpop.f32.mrf.mxu1 }
 0x144   :  { %v431_v15 = vpop.f32.mrf.mxu0 }
 0x145   :  { %v432_v17 = vadd.f32 %v431_v15, %v328_v13 }
 0x146   :  { %v956_v19 = vpop.f32.mrf.mxu0 }
 0x14c   :  { %v520_v20 = vpop.f32.mrf.mxu1 }
 0x14d   :  { %v521_v29 = vadd.f32 %v520_v20, %v432_v17 }
 0x14e   :  { %v991_v21 = vpop.f32.mrf.mxu1 }
 0x184   :  { %v639_v25 = vpop.f32.mrf.mxu0 }
 0x185   :  { %v640_v33 = vadd.f32 %v639_v25, %v521_v29 }
 0x186   :  { %v1026_v26 = vpop.f32.mrf.mxu0 }
 0x18c   :  { %v726_v34 = vpop.f32.mrf.mxu1 }
 0x18d   :  { %v727_v36 = vadd.f32 %v726_v34, %v640_v33 }
 0x18e   :  { %v1061_v37 = vpop.f32.mrf.mxu1 }
 0x18f   :  { %v743_v40 = vadd.f32 %v749_v0, %v727_v36 }
 0x191   :  { %744 = vst [vmem:[%s1526_s3] sm:$0xff] %v743_v40 }

</bundles_post_ra>
